<compile_context>
chip_gen: v7x
topology: tpu7x:2x2x1
jax: 0.10.0
libtpu: 0.0.40
codegen_flags: <defaults>
</compile_context>

<pallas_src>
import jax
import jax.numpy as jnp
from jax.experimental import pallas as pl
from jax.experimental.pallas import tpu as pltpu


# ----------------------------------------------------------------------------
# Kernels
# ----------------------------------------------------------------------------

def _ffn_resident_kernel(x_ref, gamma_ref, beta_ref, w1_ref, b1_ref,
                         w2_ref, b2_ref, o_ref):
    """One row tile, weights fully VMEM-resident: single-step FFN."""
    # LayerNorm over d_model (one-pass stats; biased variance, eps=1e-5).
    x = x_ref[...].astype(jnp.float32)
    mean = jnp.mean(x, axis=-1, keepdims=True)
    ex2 = jnp.mean(x * x, axis=-1, keepdims=True)
    var = ex2 - mean * mean
    xhat = (x - mean) * jax.lax.rsqrt(var + 1e-5)
    y = (xhat * gamma_ref[...].astype(jnp.float32)
         + beta_ref[...].astype(jnp.float32))
    y = y.astype(w1_ref.dtype)                     # bf16 MXU operands by default

    # Linear1 (d_model -> d_ff) on the MXU, f32 accumulation.
    h = jnp.dot(y, w1_ref[...], preferred_element_type=jnp.float32)
    h = h + b1_ref[...].astype(jnp.float32)
    # Swish (sigmoid on the EUP).  Dropout #1: identity at inference time.
    h = h * jax.nn.sigmoid(h)
    h = h.astype(w2_ref.dtype)

    # Linear2 (d_ff -> d_model), f32 accumulation.
    out = jnp.dot(h, w2_ref[...], preferred_element_type=jnp.float32)
    out = out + b2_ref[...].astype(jnp.float32)
    # Dropout #2: identity at inference time.
    o_ref[...] = out.astype(o_ref.dtype)


def _ffn_tiled_kernel(x_ref, gamma_ref, beta_ref, w1_ref, b1_ref,
                      w2_ref, b2_ref, o_ref, y_scr, acc_scr):
    """Streaming fallback: grid = (row_tiles, ff_tiles), ff axis is a reduction.

    LayerNorm is computed once per row tile (k == 0) and cached in y_scr;
    Linear2 partials accumulate in f32 acc_scr and are finalized at k == last.
    """
    k = pl.program_id(1)

    @pl.when(k == 0)
    def _():
        x = x_ref[...].astype(jnp.float32)
        mean = jnp.mean(x, axis=-1, keepdims=True)
        ex2 = jnp.mean(x * x, axis=-1, keepdims=True)
        var = ex2 - mean * mean
        xhat = (x - mean) * jax.lax.rsqrt(var + 1e-5)
        y = (xhat * gamma_ref[...].astype(jnp.float32)
             + beta_ref[...].astype(jnp.float32))
        y_scr[...] = y.astype(y_scr.dtype)
        acc_scr[...] = jnp.zeros_like(acc_scr)

    # Linear1 slice (d_model -> ft) + Swish.  Dropout #1: identity (eval).
    h = jnp.dot(y_scr[...], w1_ref[...], preferred_element_type=jnp.float32)
    h = h + b1_ref[...].astype(jnp.float32)
    h = h * jax.nn.sigmoid(h)

    # Linear2 partial product over this ff tile, accumulate in f32.
    acc_scr[...] += jnp.dot(h.astype(w2_ref.dtype), w2_ref[...],
                            preferred_element_type=jnp.float32)

    @pl.when(k == pl.num_programs(1) - 1)
    def _():
        out = acc_scr[...] + b2_ref[...].astype(jnp.float32)
        # Dropout #2: identity at inference time.
        o_ref[...] = out.astype(o_ref.dtype)


# ----------------------------------------------------------------------------
# Wrapper
# ----------------------------------------------------------------------------

def _round8(n):
    return max(8, (n // 8) * 8)


def _pick_ff_tile(d_ff, ff_tile):
    """Largest divisor of d_ff that is <= ff_tile and a multiple of 128."""
    if d_ff <= ff_tile:
        return d_ff
    start = ff_tile - (ff_tile % 128)
    for cand in range(start, 127, -128):
        if cand > 0 and d_ff % cand == 0:
            return cand
    return d_ff  # fall back to whole d_ff as a single tile


def _vmem_cap_bytes():
    try:
        info = pltpu.get_tpu_info()
        return int(getattr(info, "vmem_capacity_bytes", 64 * 1024 * 1024))
    except Exception:
        return 64 * 1024 * 1024  # conservative: v7x per-TensorCore size


def _vmem_limit(need, cap):
    limit = max(need + (8 << 20), 24 << 20)   # need + headroom, floor 24 MiB
    limit = min(limit, int(0.8 * cap))        # leave compiler-internal headroom
    limit = max(limit, need + (2 << 20))      # never below what we actually use
    return min(limit, cap)


def macaron_feed_forward(x, gamma, beta, w1, b1, w2, b2, *,
                         row_tile=512, ff_tile=512,
                         bf16_matmul=True, weights_resident=None):
    """x: [batch, seq, d_model]. Returns [batch, seq, d_model].

    bf16_matmul: cast matmul operands to bf16 (f32 accumulation on the MXU).
    weights_resident: None = auto (based on VMEM budget), True/False = force.
    """
    batch, seq, d_model = x.shape
    d_ff = w1.shape[1]
    rows = batch * seq

    cdt = jnp.bfloat16 if bf16_matmul else x.dtype   # matmul-operand dtype
    csz = jnp.dtype(cdt).itemsize
    xsz = jnp.dtype(x.dtype).itemsize
    osz = xsz

    vmem_cap = _vmem_cap_bytes()
    budget = int(0.70 * vmem_cap)

    # Row tile: big M amortizes weight DMA and per-grid-step overhead.
    rt = _round8(min(row_tile, rows))
    # Prefer >= 2 row tiles so the "parallel" row axis can shard across both
    # TensorCores on v7x.
    if rows > 256 and pl.cdiv(rows, rt) < 2:
        rt = _round8(rt // 2)

    def resident_need(rtc):
        return (2 * 2 * d_model * d_ff * csz          # W1 + W2 (double-buffered)
                + 2 * rtc * d_model * (xsz + osz)     # x / out blocks (double-buffered)
                + rtc * d_ff * (4 + csz)              # h in f32 + bf16 copy
                + 4 * rtc * d_model * 4               # LayerNorm temporaries
                + (1 << 20))                          # biases/gamma/beta + fudge

    resident = weights_resident
    if resident is None:
        resident = resident_need(rt) <= budget
        if not resident and rt > 128:
            # Try a smaller row tile before giving up on resident weights.
            rt_small = _round8(max(128, rt // 2))
            if resident_need(rt_small) <= budget:
                resident = True
                rt = rt_small

    # Cast weights once in the wrapper; activations cast in-kernel.
    w1c = w1.astype(cdt)
    w2c = w2.astype(cdt)
    x2 = x.reshape(rows, d_model)
    gamma2 = gamma.reshape(1, d_model)
    beta2 = beta.reshape(1, d_model)
    b1_2 = b1.reshape(1, d_ff)
    b2_2 = b2.reshape(1, d_model)

    n_row_tiles = pl.cdiv(rows, rt)

    if resident:
        need = resident_need(rt)
        out2 = pl.pallas_call(
            _ffn_resident_kernel,
            out_shape=jax.ShapeDtypeStruct((rows, d_model), x.dtype),
            grid_spec=pltpu.PrefetchScalarGridSpec(
                num_scalar_prefetch=0,
                grid=(n_row_tiles,),
                in_specs=[
                    pl.BlockSpec((rt, d_model), lambda i: (i, 0)),       # x rows
                    pl.BlockSpec((1, d_model), lambda i: (0, 0)),        # gamma
                    pl.BlockSpec((1, d_model), lambda i: (0, 0)),        # beta
                    pl.BlockSpec((d_model, d_ff), lambda i: (0, 0)),     # W1 (resident)
                    pl.BlockSpec((1, d_ff), lambda i: (0, 0)),           # b1
                    pl.BlockSpec((d_ff, d_model), lambda i: (0, 0)),     # W2 (resident)
                    pl.BlockSpec((1, d_model), lambda i: (0, 0)),        # b2
                ],
                out_specs=pl.BlockSpec((rt, d_model), lambda i: (i, 0)),
            ),
            compiler_params=pltpu.CompilerParams(
                dimension_semantics=("parallel",),
                vmem_limit_bytes=_vmem_limit(need, vmem_cap),
            ),
        )(x2, gamma2, beta2, w1c, b1_2, w2c, b2_2)
    else:
        ft = _pick_ff_tile(d_ff, ff_tile)
        need = (2 * 2 * d_model * ft * csz            # W1/W2 tiles (double-buffered)
                + 2 * rt * d_model * (xsz + osz)      # x / out blocks
                + rt * d_model * (csz + 4)            # y_scr + f32 accumulator
                + rt * ft * (4 + csz)                 # h intermediate
                + 4 * rt * d_model * 4                # LayerNorm temporaries
                + (1 << 20))
        out2 = pl.pallas_call(
            _ffn_tiled_kernel,
            out_shape=jax.ShapeDtypeStruct((rows, d_model), x.dtype),
            grid_spec=pltpu.PrefetchScalarGridSpec(
                num_scalar_prefetch=0,
                grid=(n_row_tiles, d_ff // ft),
                in_specs=[
                    pl.BlockSpec((rt, d_model), lambda i, k: (i, 0)),    # x rows
                    pl.BlockSpec((1, d_model), lambda i, k: (0, 0)),     # gamma
                    pl.BlockSpec((1, d_model), lambda i, k: (0, 0)),     # beta
                    pl.BlockSpec((d_model, ft), lambda i, k: (0, k)),    # W1 tile
                    pl.BlockSpec((1, ft), lambda i, k: (0, k)),          # b1 tile
                    pl.BlockSpec((ft, d_model), lambda i, k: (k, 0)),    # W2 tile
                    pl.BlockSpec((1, d_model), lambda i, k: (0, 0)),     # b2
                ],
                out_specs=pl.BlockSpec((rt, d_model), lambda i, k: (i, 0)),
                scratch_shapes=[
                    pltpu.VMEM((rt, d_model), cdt),           # cached LayerNorm out
                    pltpu.VMEM((rt, d_model), jnp.float32),   # f32 accumulator
                ],
            ),
            compiler_params=pltpu.CompilerParams(
                dimension_semantics=("parallel", "arbitrary"),
                vmem_limit_bytes=_vmem_limit(need, vmem_cap),
            ),
        )(x2, gamma2, beta2, w1c, b1_2, w2c, b2_2)

    return out2.reshape(batch, seq, d_model)


# ----------------------------------------------------------------------------
# Reference + tests
# ----------------------------------------------------------------------------

def _init_params(key, d_model, d_ff, dtype=jnp.float32):
    """Deterministic parameter init (LayerNorm + two Linears, torch-like)."""
    k1, k2, k3, k4 = jax.random.split(key, 4)
    gamma = jnp.ones((d_model,), dtype)
    beta = jnp.zeros((d_model,), dtype)
    bound1 = 1.0 / (d_model ** 0.5)
    w1 = jax.random.uniform(k1, (d_model, d_ff), dtype, -bound1, bound1)
    b1 = jax.random.uniform(k2, (d_ff,), dtype, -bound1, bound1)
    bound2 = 1.0 / (d_ff ** 0.5)
    w2 = jax.random.uniform(k3, (d_ff, d_model), dtype, -bound2, bound2)
    b2 = jax.random.uniform(k4, (d_model,), dtype, -bound2, bound2)
    return gamma, beta, w1, b1, w2, b2


def _reference(x, gamma, beta, w1, b1, w2, b2):
    """Pure-JAX f32 reference of the same forward pass (dropout = identity)."""
    xf = x.astype(jnp.float32)
    mean = jnp.mean(xf, axis=-1, keepdims=True)
    var = jnp.mean((xf - mean) ** 2, axis=-1, keepdims=True)
    y = ((xf - mean) * jax.lax.rsqrt(var + 1e-5) * gamma.astype(jnp.float32)
         + beta.astype(jnp.float32))
    h = y @ w1.astype(jnp.float32) + b1.astype(jnp.float32)
    h = h * jax.nn.sigmoid(h)
    return (h @ w2.astype(jnp.float32) + b2.astype(jnp.float32)).astype(x.dtype)


if __name__ == "__main__":
    # TODO(synk): torch.nn.Dropout train-mode masking is not implemented
    # (inference / eval semantics only, matching model.eval()).
    key = jax.random.PRNGKey(0)

    # --- Test 1: tiny shapes, exact f32 matmul path (bf16_matmul=False) ---
    d_model, d_ff = 32, 64
    batch, seq = 2, 8
    kx, kp, key = jax.random.split(key, 3)
    x = jax.random.normal(kx, (batch, seq, d_model), jnp.float32)
    params = _init_params(kp, d_model, d_ff)
    out = jax.block_until_ready(
        macaron_feed_forward(x, *params, bf16_matmul=False))
    ref = _reference(x, *params)
    assert out.shape == (batch, seq, d_model)
    assert jnp.allclose(out, ref, atol=1e-4, rtol=1e-4), \
        float(jnp.max(jnp.abs(out - ref)))

    # --- Test 2: resident-weight fast path, bf16 MXU operands, 2 row tiles ---
    d_model, d_ff = 128, 1024
    batch, seq = 2, 192            # rows = 384 -> rt 192, grid (2,)
    kx, kp, key = jax.random.split(key, 3)
    x = jax.random.normal(kx, (batch, seq, d_model), jnp.float32)
    params = _init_params(kp, d_model, d_ff)
    out = jax.block_until_ready(macaron_feed_forward(x, *params))
    ref = _reference(x, *params)
    assert out.shape == (batch, seq, d_model)
    assert jnp.allclose(out, ref, atol=3e-2, rtol=3e-2), \
        float(jnp.max(jnp.abs(out - ref)))

    # --- Test 3: forced streaming (d_ff-tiled) fallback + ragged row count ---
    d_model, d_ff = 128, 1024
    batch, seq = 2, 99             # rows = 198 -> masked partial last row block
    kx, kp = jax.random.split(key)
    x = jax.random.normal(kx, (batch, seq, d_model), jnp.float32)
    params = _init_params(kp, d_model, d_ff)
    out = jax.block_until_ready(
        macaron_feed_forward(x, *params, weights_resident=False))
    ref = _reference(x, *params)
    assert out.shape == (batch, seq, d_model)
    assert jnp.allclose(out, ref, atol=3e-2, rtol=3e-2), \
        float(jnp.max(jnp.abs(out - ref)))

    print("KERNEL_OK")
</pallas_src>

<mosaic_0001>
module attributes {stable_mosaic.version = 11 : i64} {
  func.func @_ffn_resident_kernel(%arg0: i32, %arg1: memref<16x32xf32, #tpu.memory_space<vmem>>, %arg2: memref<1x32xf32, #tpu.memory_space<vmem>>, %arg3: memref<1x32xf32, #tpu.memory_space<vmem>>, %arg4: memref<32x64xf32, #tpu.memory_space<vmem>>, %arg5: memref<1x64xf32, #tpu.memory_space<vmem>>, %arg6: memref<64x32xf32, #tpu.memory_space<vmem>>, %arg7: memref<1x32xf32, #tpu.memory_space<vmem>>, %arg8: memref<16x32xf32, #tpu.memory_space<vmem>>) attributes {dimension_semantics = [#tpu.dimension_semantics<parallel>], iteration_bounds = array<i64: 1>, scalar_prefetch = 0 : i64, scratch_operands = 0 : i64, tpu.core_type = #tpu.core_type<tc>, window_params = [{transform_indices = @transform_0, window_bounds = array<i64: 16, 32>}, {pipeline_mode = #tpu.pipeline_mode<synchronous>, transform_indices = @transform_1, window_bounds = array<i64: 1, 32>}, {pipeline_mode = #tpu.pipeline_mode<synchronous>, transform_indices = @transform_2, window_bounds = array<i64: 1, 32>}, {pipeline_mode = #tpu.pipeline_mode<synchronous>, transform_indices = @transform_3, window_bounds = array<i64: 32, 64>}, {pipeline_mode = #tpu.pipeline_mode<synchronous>, transform_indices = @transform_4, window_bounds = array<i64: 1, 64>}, {pipeline_mode = #tpu.pipeline_mode<synchronous>, transform_indices = @transform_5, window_bounds = array<i64: 64, 32>}, {pipeline_mode = #tpu.pipeline_mode<synchronous>, transform_indices = @transform_6, window_bounds = array<i64: 1, 32>}, {transform_indices = @transform_7, window_bounds = array<i64: 16, 32>}]} {
    %c0 = arith.constant 0 : index
    %c0_0 = arith.constant 0 : index
    %0 = vector.load %arg1[%c0, %c0_0] : memref<16x32xf32, #tpu.memory_space<vmem>>, vector<16x32xf32>
    %cst = arith.constant dense<0.000000e+00> : vector<16xf32>
    %1 = vector.multi_reduction <add>, %0, %cst [1] : vector<16x32xf32> to vector<16xf32>
    %2 = vector.shape_cast %1 : vector<16xf32> to vector<16x1xf32>
    %cst_1 = arith.constant 3.200000e+01 : f32
    %3 = vector.broadcast %cst_1 : f32 to vector<16x1xf32>
    %4 = arith.divf %2, %3 : vector<16x1xf32>
    %5 = arith.mulf %0, %0 : vector<16x32xf32>
    %cst_2 = arith.constant dense<0.000000e+00> : vector<16xf32>
    %6 = vector.multi_reduction <add>, %5, %cst_2 [1] : vector<16x32xf32> to vector<16xf32>
    %7 = vector.shape_cast %6 : vector<16xf32> to vector<16x1xf32>
    %cst_3 = arith.constant 3.200000e+01 : f32
    %8 = vector.broadcast %cst_3 : f32 to vector<16x1xf32>
    %9 = arith.divf %7, %8 : vector<16x1xf32>
    %10 = arith.mulf %4, %4 : vector<16x1xf32>
    %11 = arith.subf %9, %10 : vector<16x1xf32>
    %12 = vector.broadcast %4 : vector<16x1xf32> to vector<16x32xf32>
    %13 = arith.subf %0, %12 : vector<16x32xf32>
    %cst_4 = arith.constant 9.99999974E-6 : f32
    %14 = vector.broadcast %cst_4 : f32 to vector<16x1xf32>
    %15 = arith.addf %11, %14 : vector<16x1xf32>
    %16 = math.rsqrt %15 : vector<16x1xf32>
    %17 = vector.broadcast %16 : vector<16x1xf32> to vector<16x32xf32>
    %18 = arith.mulf %13, %17 : vector<16x32xf32>
    %c0_5 = arith.constant 0 : index
    %c0_6 = arith.constant 0 : index
    %19 = vector.load %arg2[%c0_5, %c0_6] : memref<1x32xf32, #tpu.memory_space<vmem>>, vector<1x32xf32>
    %20 = vector.broadcast %19 : vector<1x32xf32> to vector<16x32xf32>
    %21 = arith.mulf %18, %20 : vector<16x32xf32>
    %c0_7 = arith.constant 0 : index
    %c0_8 = arith.constant 0 : index
    %22 = vector.load %arg3[%c0_7, %c0_8] : memref<1x32xf32, #tpu.memory_space<vmem>>, vector<1x32xf32>
    %23 = vector.broadcast %22 : vector<1x32xf32> to vector<16x32xf32>
    %24 = arith.addf %21, %23 : vector<16x32xf32>
    %c0_9 = arith.constant 0 : index
    %c0_10 = arith.constant 0 : index
    %25 = vector.load %arg4[%c0_9, %c0_10] : memref<32x64xf32, #tpu.memory_space<vmem>>, vector<32x64xf32>
    %cst_11 = arith.constant dense<0.000000e+00> : vector<16x64xf32>
    %26 = tpu.matmul %24, %25, %cst_11 {dimension_numbers = #tpu.dot_dimension_numbers<[1], [0], [0], [1], [0, 0, 1, 1], [], []>} : vector<16x32xf32>, vector<32x64xf32>, vector<16x64xf32> -> vector<16x64xf32>
    %c0_12 = arith.constant 0 : index
    %c0_13 = arith.constant 0 : index
    %27 = vector.load %arg5[%c0_12, %c0_13] : memref<1x64xf32, #tpu.memory_space<vmem>>, vector<1x64xf32>
    %28 = vector.broadcast %27 : vector<1x64xf32> to vector<16x64xf32>
    %29 = arith.addf %26, %28 : vector<16x64xf32>
    %30 = arith.negf %29 : vector<16x64xf32>
    %31 = math.exp %30 : vector<16x64xf32>
    %cst_14 = arith.constant 1.000000e+00 : f32
    %32 = vector.broadcast %cst_14 : f32 to vector<16x64xf32>
    %33 = arith.addf %32, %31 : vector<16x64xf32>
    %34 = arith.divf %32, %33 : vector<16x64xf32>
    %35 = arith.mulf %29, %34 : vector<16x64xf32>
    %c0_15 = arith.constant 0 : index
    %c0_16 = arith.constant 0 : index
    %36 = vector.load %arg6[%c0_15, %c0_16] : memref<64x32xf32, #tpu.memory_space<vmem>>, vector<64x32xf32>
    %cst_17 = arith.constant dense<0.000000e+00> : vector<16x32xf32>
    %37 = tpu.matmul %35, %36, %cst_17 {dimension_numbers = #tpu.dot_dimension_numbers<[1], [0], [0], [1], [0, 0, 1, 1], [], []>} : vector<16x64xf32>, vector<64x32xf32>, vector<16x32xf32> -> vector<16x32xf32>
    %c0_18 = arith.constant 0 : index
    %c0_19 = arith.constant 0 : index
    %38 = vector.load %arg7[%c0_18, %c0_19] : memref<1x32xf32, #tpu.memory_space<vmem>>, vector<1x32xf32>
    %39 = vector.broadcast %38 : vector<1x32xf32> to vector<16x32xf32>
    %40 = arith.addf %37, %39 : vector<16x32xf32>
    %c0_20 = arith.constant 0 : index
    %c0_21 = arith.constant 0 : index
    %41 = vector.load %arg8[%c0_20, %c0_21] : memref<16x32xf32, #tpu.memory_space<vmem>>, vector<16x32xf32>
    tpu.vector_store %arg8[%c0_20, %c0_21], %40 {strides = array<i32>} : memref<16x32xf32, #tpu.memory_space<vmem>>, vector<16x32xf32>,
    return
  }
  func.func @transform_0(%arg0: i32) -> (i32, i32) {
    %c0_i32 = arith.constant 0 : i32
    %c0_i32_0 = arith.constant 0 : i32
    return %arg0, %c0_i32 : i32, i32
  }
  func.func @transform_1(%arg0: i32) -> (i32, i32) {
    %c0_i32 = arith.constant 0 : i32
    %c0_i32_0 = arith.constant 0 : i32
    %c0_i32_1 = arith.constant 0 : i32
    return %c0_i32, %c0_i32_0 : i32, i32
  }
  func.func @transform_2(%arg0: i32) -> (i32, i32) {
    %c0_i32 = arith.constant 0 : i32
    %c0_i32_0 = arith.constant 0 : i32
    %c0_i32_1 = arith.constant 0 : i32
    return %c0_i32, %c0_i32_0 : i32, i32
  }
  func.func @transform_3(%arg0: i32) -> (i32, i32) {
    %c0_i32 = arith.constant 0 : i32
    %c0_i32_0 = arith.constant 0 : i32
    %c0_i32_1 = arith.constant 0 : i32
    return %c0_i32, %c0_i32_0 : i32, i32
  }
  func.func @transform_4(%arg0: i32) -> (i32, i32) {
    %c0_i32 = arith.constant 0 : i32
    %c0_i32_0 = arith.constant 0 : i32
    %c0_i32_1 = arith.constant 0 : i32
    return %c0_i32, %c0_i32_0 : i32, i32
  }
  func.func @transform_5(%arg0: i32) -> (i32, i32) {
    %c0_i32 = arith.constant 0 : i32
    %c0_i32_0 = arith.constant 0 : i32
    %c0_i32_1 = arith.constant 0 : i32
    return %c0_i32, %c0_i32_0 : i32, i32
  }
  func.func @transform_6(%arg0: i32) -> (i32, i32) {
    %c0_i32 = arith.constant 0 : i32
    %c0_i32_0 = arith.constant 0 : i32
    %c0_i32_1 = arith.constant 0 : i32
    return %c0_i32, %c0_i32_0 : i32, i32
  }
  func.func @transform_7(%arg0: i32) -> (i32, i32) {
    %c0_i32 = arith.constant 0 : i32
    %c0_i32_0 = arith.constant 0 : i32
    return %arg0, %c0_i32 : i32, i32
  }
}

</mosaic_0001>

<bundles_post_ra>
// kernel: tpu_custom_call.1
= control target key start
LH: loop header
LB: loop body
LE: loop exit
PB: predicated region body
PF: predicated region fallthrough
CT: control target
= control target key end

     0   :  { %vm29_vm0 = vcmask 261120   ;;  %s536_s0 = inlined_call_operand.vmem [shape: f32[16,32], index: 0, kind: input, shape index: {}]   ;;  %s537_s1 = inlined_call_operand.vmem [shape: f32[1,32], index: 1, kind: input, shape index: {}]   ;;  %s538_s2 = inlined_call_operand.vmem [shape: f32[1,32], index: 2, kind: input, shape index: {}]   ;;  %s539_s3 = inlined_call_operand.vmem [shape: f32[32,64], index: 3, kind: input, shape index: {}]   ;;  %s540_s4 = inlined_call_operand.vmem [shape: f32[1,64], index: 4, kind: input, shape index: {}]   ;;  %s541_s5 = inlined_call_operand.vmem [shape: f32[64,32], index: 5, kind: input, shape index: {}]   ;;  %s542_s6 = inlined_call_operand.vmem [shape: f32[1,32], index: 6, kind: input, shape index: {}]   ;;  %s543_s7 = inlined_call_operand.hbm [shape: f32[16,32], index: 7, kind: output, shape index: {}]  }
   0x1   :  { %v27_v0 = vld [vmem:[%s536_s0] sm:$0xff]  ;;  %v28_v1 = vld [vmem:[%s536_s0 + $0x8] sm:$0xff] }
   0x2   :  { %12 = vsyncpa [#allocation3], 0  ;;  %v30_v2 = vsel %vm29_vm0, %v27_v0, 0.0  ;;  %v39_v3 = vmul.f32 %v27_v0, %v27_v0  ;;  %v40_v4 = vmul.f32 %v28_v1, %v28_v1  ;;  %v33_v6 = vsel %vm29_vm0, %v28_v1, 0.0  ;;  %v79_v8 = vld [vmem:[%s539_s3] sm:$0xff]  ;;  %v80_v9 = vld [vmem:[%s539_s3 + $0x8] sm:$0xff] }
   0x3   :  { %31 = vadd.xlane.f32.xlu0 %v30_v2  ;;  %v81_v10 = vld [vmem:[%s539_s3 + $0x10] sm:$0xff]  ;;  %v356_v11 = vpack.c.bf16 %v80_v9, %v79_v8  ;;  %v82_v12 = vld [vmem:[%s539_s3 + $0x18] sm:$0xff]  ;;  %v300_v30 = vld [vmem:[%s537_s1] ss:$0 sm:$0xff]  ;;  %vm200_vm1 = vcmask 523264   ;;  %s419_s30 = smov [#allocation2]  }
   0x4   :  { %v41_v5 = vsel %vm29_vm0, %v39_v3, 0.0  ;;  %v44_v7 = vsel %vm29_vm0, %v40_v4, 0.0  ;;  %v360_v13 = vpack.c.bf16 %v82_v12, %v81_v10  ;;  %v301_v32 = vld [vmem:[%s538_s2] ss:$0 sm:$0xff]  ;;  %v186_v41 = vld [vmem:[%s541_s5 + $0x8] sm:$0xff]  ;;  %v187_v43 = vld [vmem:[%s541_s5 + $0x10] sm:$0xff] }
   0x5   :  { %42 = vadd.xlane.f32.xlu1 %v41_v5  ;;  %357 = vmatprep.subr.bf16.mxu0 %v356_v11  ;;  %v185_v40 = vld [vmem:[%s541_s5] sm:$0xff]  ;;  %v188_v44 = vld [vmem:[%s541_s5 + $0x18] sm:$0xff]  ;;  %v190_v47 = vld [vmem:[%s541_s5 + $0x28] sm:$0xff]  ;;  %s289_s8 = sshll.u32 %s419_s30, 4  ;;  %s290_s8 = int_to_ptr.vmem [resolvable:$true] %s289_s8 }
   0x6   :  { %359 = vmatpush3.bf16.msra.mxu0 %v356_v11  ;;  %v364_v42 = vpack.c.bf16 %v186_v41, %v185_v40  ;;  %v368_v45 = vpack.c.bf16 %v188_v44, %v187_v43  ;;  %v189_v46 = vld [vmem:[%s541_s5 + $0x20] sm:$0xff]  ;;  %v191_v49 = vld [vmem:[%s541_s5 + $0x30] sm:$0xff]  ;;  %v192_v50 = vld [vmem:[%s541_s5 + $0x38] sm:$0xff]  ;;  %s395_s9 = scalar_lea.vmem %s290_s8, 256  ;;  %p400_p1 = scmp.lt.s32.totalorder %s290_s8, %s290_s8 }
   0x7   :  { %34 = vadd.xlane.f32.xlu0 %v33_v6  ;;  %361 = vmatprep.subr.bf16.mxu0 %v360_v13  ;;  %v372_v48 = vpack.c.bf16 %v190_v47, %v189_v46  ;;  %v376_v51 = vpack.c.bf16 %v192_v50, %v191_v49  ;;  %v302_v52 = vld [vmem:[%s540_s4] ss:$0 sm:$0xff]  ;;  %p396_p0 = scmp.ne.s32.totalorder %s290_s8, %s395_s9  ;;  %p401_p2 = scmp.lt.s32.totalorder %s395_s9, %s395_s9 }
   0x8   :  { %365 = vmatprep.subr.bf16.mxu1 %v364_v42  ;;  %v307_v3 = vld [vmem:[%s542_s6] ss:$0 sm:$0xff] }
   0x9   :  { %45 = vadd.xlane.f32.xlu1 %v44_v7  ;;  %367 = vmatpush3.bf16.msra.mxu1 %v364_v42  ;;  %p402_p3 = por %p401_p2, %p400_p1 }
   0xa   :  { %363 = vmatpush3.bf16.msra.mxu0 %v360_v13  ;;  %369 = vmatprep.subr.bf16.mxu1 %v368_v45 }
   0xb   :  { %p403_p4 = pnand %p402_p3, %p396_p0 }
   0xd   :  { %371 = vmatpush3.bf16.msra.mxu1 %v368_v45 }
   0xe   :  { %373 = vmatprep.subr.bf16.mxu1 %v372_v48 }
  0x11   :  { %375 = vmatpush3.bf16.msra.mxu1 %v372_v48 }
  0x12   :  { %377 = vmatprep.subr.bf16.mxu1 %v376_v51 }
  0x15   :  { %379 = vmatpush3.bf16.msra.mxu1 %v376_v51 }
  0x90   :  { %v32_v14 = vpop.xlane.xlu0 %31 }
  0x91   :  { %v37_v15 = vmul.f32 0.03125, %v32_v14 }
  0x92   :  { %v43_v16 = vpop.xlane.xlu1 %42 }
  0x93   :  { %v49_v17 = vmul.f32 %v37_v15, %v37_v15  ;;  %v47_v18 = vmul.f32 0.03125, %v43_v16  ;;  %v53_v28 = vsub.f32 %v27_v0, %v37_v15 }
  0x94   :  { %v35_v19 = vpop.xlane.xlu0 %34 }
  0x95   :  { %v51_v20 = vsub.f32 %v47_v18, %v49_v17  ;;  %v38_v21 = vmul.f32 0.03125, %v35_v19 }
  0x96   :  { %v46_v22 = vpop.xlane.xlu1 %45 }
  0x97   :  { %v55_v23 = vadd.f32 1e-05, %v51_v20  ;;  %v50_v24 = vmul.f32 %v38_v21, %v38_v21  ;;  %v48_v25 = vmul.f32 0.03125, %v46_v22  ;;  %v54_v33 = vsub.f32 %v28_v1, %v38_v21 }
  0x99   :  { %383 = vrsqrt.f32 %v55_v23  ;;  %v52_v26 = vsub.f32 %v48_v25, %v50_v24 }
  0x9b   :  { %v56_v27 = vadd.f32 1e-05, %v52_v26 }
  0x9d   :  { %385 = vrsqrt.f32 %v56_v27 }
  0xa3   :  { %v384_v29 = vpop.eup %383 }
  0xa4   :  { %v59_v31 = vmul.f32 %v384_v29, %v53_v28 }
  0xa6   :  { %v68_v34 = vmul.f32 %v300_v30, %v59_v31 }
  0xa7   :  { %v386_v35 = vpop.eup %385 }
  0xa8   :  { %v60_v36 = vmul.f32 %v386_v35, %v54_v33  ;;  %v77_v37 = vadd.f32 %v301_v32, %v68_v34 }
  0xaa   :  { %v69_v38 = vmul.f32 %v300_v30, %v60_v36  ;;  %334 = vmatprep.mubr.msk.f32.mxu0 %vm29_vm0, %v77_v37 }
  0xac   :  { %v78_v39 = vadd.f32 %v301_v32, %v69_v38 }
  0xae   :  { %335 = vmatmul.mubr.msk.f32.vlgmr.msra.gmra.mrb[0].mxu0 %vm29_vm0, %v78_v39 }
 0x181   :  { %v336_v53 = vpop.f32.mrb[0].mxu0 }
 0x182   :  { %v168_v54 = vadd.f32 %v336_v53, %v302_v52  ;;  %v162_v55 = vpop.f32.mrb[1].mxu0 }
 0x183   :  { %v163_v56 = vadd.f32 %v302_v52, %v162_v55 }
 0x184   :  { %v306_v57 = vmul.f32 -1.442695, %v168_v54 }
 0x185   :  { %v305_v58 = vmul.f32 -1.442695, %v163_v56 }
 0x186   :  { %387 = vpow2.f32 %v306_v57 }
 0x187   :  { %389 = vpow2.f32 %v305_v58 }
 0x190   :  { %v388_v59 = vpop.eup %387 }
 0x191   :  { %v390_v60 = vpop.eup %389  ;;  %v178_v61 = vadd.f32 1.0, %v388_v59 }
 0x192   :  { %v177_v62 = vadd.f32 1.0, %v390_v60 }
 0x193   :  { %391 = vrcp.f32 %v178_v61 }
 0x194   :  { %393 = vrcp.f32 %v177_v62 }
 0x19d   :  { %v392_v63 = vpop.eup %391 }
 0x19e   :  { %v394_v0 = vpop.eup %393  ;;  %v184_v2 = vmul.f32 %v392_v63, %v168_v54 }
 0x19f   :  { %v183_v1 = vmul.f32 %v394_v0, %v163_v56 }
 0x1a1   :  { %353 = vmatprep.mubr.msk.f32.mxu1 %vm200_vm1, %v183_v1 }
 0x1a2   :  { %354 = vmatmul.mubr.msk.f32.vlgmr.msra.gmra.mrb[0].mxu1 %vm200_vm1, %v184_v2 }
 0x275   :  { %v355_v4 = vpop.f32.mrb[0].mxu1 }
 0x276   :  { %v279_v5 = vadd.f32 %v355_v4, %v307_v3  ;;  %v273_v6 = vpop.f32.mrb[1].mxu1 }
 0x277   :  { %v274_v7 = vadd.f32 %v307_v3, %v273_v6 }
 0x278   :  { %283 = vst.msk [vmem:[#allocation2 + $0x8] sm:$0xff] %vm29_vm0, %v279_v5 }
 0x279   :  { %282 = vst.msk [vmem:[#allocation2] sm:$0xff] %vm29_vm0, %v274_v7 }
 0x27a   :  { %406 = shalt.err (!%p403_p4)
}
 0x27b   :  { %s407_s11 = scalar_lea.hbm %s543_s7, 256 }
 0x27c   :  { %p408_p5 = scmp.ne.s32.totalorder %s543_s7, %s407_s11  ;;  %p411_p6 = scmp.lt.u32.totalorder %s407_s11, %s543_s7 }
 0x27e   :  { %p413_p7 = pnand %p411_p6, %p408_p5 }
 0x280   :  { %416 = shalt.err (!%p413_p7)
}
 0x281   :  { %s420_s15 = smov 128   ;;  %s421_s16 = smov 8  }
 0x282   :  { %295 = dma.vmem_to_hbm [thread:$0]  %s290_s8, 256, %s543_s7, [#allocation3], %s420_s15, %s420_s15, %s421_s16  }
 0x283   :  { %417 = dma.done.wait [#allocation3], 256  }
 0x284   :  { %418 = vsyncadd [#allocation3], 4294967040 }
 0x285   :  { %299 = vsyncpa [#allocation3], 1 }

</bundles_post_ra>
